<compile_context>
chip_gen: v7x
topology: tpu7x:2x2x1
jax: 0.10.0
libtpu: 0.0.40
codegen_flags: <defaults>
</compile_context>

<pallas_src>
import functools

import jax
import jax.numpy as jnp
from jax.experimental import pallas as pl
from jax.experimental.pallas import tpu as pltpu


# ----------------------------------------------------------------------------- kernels
def _fuse_kernel(up_ref, xp_ref, wx_ref, bn_ref, y_ref, sums_ref):
    """Pass 1: fused [1x1 conv | concat | BN | ReLU] -> y, plus per-tile channel sums.

    up_ref : (1, Cu, T)    transposed-conv half of the concat (bias folded into BN shift)
    xp_ref : (1, Cin, T)   raw skip features (1x1 conv applied here on the MXU)
    wx_ref : (Cx, Cin)     1x1-conv weight
    bn_ref : (n_out, 2)    columns = [scale, shift] (BN folded, f32)
    y_ref  : (1, n_out, T) lane-dense output tile of relu(bn(concat))
    sums_ref: (1, 1, n_out, 1) per-tile partial channel sums (f32)
    """
    cu = up_ref.shape[1]
    scale = bn_ref[:, 0:1]                                       # (n_out, 1)
    shift = bn_ref[:, 1:2]

    u = up_ref[0]                                                # (Cu, T)
    xh = jnp.dot(wx_ref[...], xp_ref[0],
                 preferred_element_type=jnp.float32)             # (Cx, T)  1x1 conv
    u = jnp.maximum(u * scale[:cu] + shift[:cu], 0.0)            # relu(bn(.)), f32
    xh = jnp.maximum(xh * scale[cu:] + shift[cu:], 0.0)

    # Direct slice stores (no jnp.concatenate -> no extra VMEM temp / store pass).
    y_ref[0, :cu] = u.astype(y_ref.dtype)
    y_ref[0, cu:] = xh.astype(y_ref.dtype)

    # Per-tile partial sums; cross-tile reduction happens in the wrapper, so both grid
    # axes stay "parallel" (v7x megacore friendly at small batch).
    sums_ref[0, 0, :cu] = jnp.sum(u, axis=1, keepdims=True)
    sums_ref[0, 0, cu:] = jnp.sum(xh, axis=1, keepdims=True)


def _apply_kernel(y_ref, att_ref, o_ref):
    """Pass 2: spatial attention + fused combine  y * (s_att + c_att), reading only y.

    y_ref  : (1, n_out, T)
    att_ref: (1, n_out, 2)  columns = [w_sq, c_att]  (c_att is the hoisted GAB output)
    o_ref  : (1, n_out, T)  lane-dense output tile
    """
    y = y_ref[0].astype(jnp.float32)                             # (n_out, T)
    wsq = att_ref[0, :, 0:1]                                     # (n_out, 1)
    catt = att_ref[0, :, 1:2]                                    # (n_out, 1)

    # Spatial logit: VPU broadcast-mul + sublane reduction (no 1-column MXU matmul).
    s_att = jax.nn.sigmoid(jnp.sum(y * wsq, axis=0, keepdims=True))   # (1, T)
    o_ref[0] = (y * (s_att + catt)).astype(o_ref.dtype)


# ----------------------------------------------------------------------------- helpers
def _vmem_limit_bytes():
    """Generation-aware scoped-VMEM limit: half of physical VMEM, capped at 64 MiB."""
    cap = None
    try:
        cap = pltpu.get_tpu_info().vmem_capacity_bytes
    except Exception:
        cap = None
    if cap is None:
        try:
            kind = jax.devices()[0].device_kind.lower()
            cap = 64 * 1024 * 1024 if "v7" in kind else 128 * 1024 * 1024
        except Exception:
            cap = 64 * 1024 * 1024
    return int(min(cap // 2, 64 * 1024 * 1024))


def _choose_hw_tile(hw, per_elem_bytes, budget_bytes):
    """Largest multiple-of-128 divisor of hw whose double-buffered block set fits."""
    best = None
    t = 128
    while t <= hw:                               # power-of-two multiples of 128 first
        if hw % t == 0 and per_elem_bytes * t <= budget_bytes:
            best = t
        t *= 2
    if best is not None:
        return best
    cap = max((budget_bytes // max(per_elem_bytes, 1)) // 128 * 128, 128)
    for t in range(min(hw, cap), 0, -128):       # any multiple-of-128 divisor
        if hw % t == 0:
            return t
    return hw                                    # last resort; caller guards VMEM fit


# ----------------------------------------------------------------------------- wrapper
def decoderv2_forward(up_p, x_p, params, *, eps=1e-5, hw_tile=None,
                      act_dtype=jnp.float32):
    """up_p: (N, up_in, H, W), x_p: (N, x_in, 2H, 2W). Returns (N, n_out, 2H, 2W)."""
    N, _, H, W = up_p.shape
    wt, bt, wx = params["wt"], params["bt"], params["wx"]
    up_out = wt.shape[1]
    x_out, x_in = wx.shape
    n_out = up_out + x_out
    H2, W2 = 2 * H, 2 * W
    HW2 = H2 * W2
    assert x_p.shape == (N, x_in, H2, W2)

    act_dtype = jnp.dtype(act_dtype)
    itemsize = act_dtype.itemsize

    # ---- front-end: ConvTranspose2d(k=2, s=2) as einsum + reshape interleave (XLA) ----
    up = jnp.einsum("nchw,codk->nohdwk", up_p, wt).reshape(N, up_out, H2, W2)

    # NCHW -> (N, C, HW): pure reshape, no transpose, no extra HBM traffic.
    up_flat = up.reshape(N, up_out, HW2).astype(act_dtype)
    x_flat = x_p.reshape(N, x_in, HW2).astype(act_dtype)

    # BatchNorm (inference) folded into per-channel scale/shift; ConvTranspose bias is
    # folded into the shift of the `up` channels (free algebra, no wrapper add pass).
    scale = params["bn_gamma"] / jnp.sqrt(params["bn_var"] + eps)
    shift = params["bn_beta"] - params["bn_mean"] * scale
    shift = shift.at[:up_out].add(scale[:up_out] * bt)
    bn = jnp.stack([scale, shift], axis=1).astype(jnp.float32)          # (n_out, 2)

    vmem_limit = _vmem_limit_bytes()
    if hw_tile is None:
        per_elem = 2 * itemsize * (up_out + x_in + n_out)               # dbl-buf in+out
        hw_tile = _choose_hw_tile(HW2, per_elem,
                                  min(24 * 1024 * 1024, vmem_limit // 2))
    assert HW2 % hw_tile == 0, "HW tile must divide H2*W2"
    n_tiles = HW2 // hw_tile
    blk_bytes = 2 * itemsize * hw_tile * (up_out + x_in + n_out) + (1 << 20)
    if blk_bytes > vmem_limit:
        raise ValueError(
            f"hw_tile={hw_tile} needs ~{blk_bytes >> 20} MiB of blocks, "
            f"over the {vmem_limit >> 20} MiB VMEM limit")

    cparams = dict(vmem_limit_bytes=vmem_limit)

    # ---- pass 1: emit y = relu(bn(concat)) + per-tile channel sums -------------------
    flops1 = 2 * N * HW2 * x_out * x_in + 6 * N * HW2 * n_out
    bytes1 = itemsize * N * (up_out + x_in + n_out) * HW2 + 4 * N * n_tiles * n_out
    y, part_sums = pl.pallas_call(
        _fuse_kernel,
        out_shape=(jax.ShapeDtypeStruct((N, n_out, HW2), act_dtype),
                   jax.ShapeDtypeStruct((N, n_tiles, n_out, 1), jnp.float32)),
        grid_spec=pl.GridSpec(
            grid=(N, n_tiles),
            in_specs=[
                pl.BlockSpec((1, up_out, hw_tile), lambda n, t: (n, 0, t)),
                pl.BlockSpec((1, x_in, hw_tile), lambda n, t: (n, 0, t)),
                pl.BlockSpec((x_out, x_in), lambda n, t: (0, 0)),
                pl.BlockSpec((n_out, 2), lambda n, t: (0, 0)),
            ],
            out_specs=[
                pl.BlockSpec((1, n_out, hw_tile), lambda n, t: (n, 0, t)),
                pl.BlockSpec((1, 1, n_out, 1), lambda n, t: (n, t, 0, 0)),
            ],
        ),
        compiler_params=pltpu.CompilerParams(
            dimension_semantics=("parallel", "parallel"), **cparams),
        cost_estimate=pl.CostEstimate(
            flops=flops1, transcendentals=0, bytes_accessed=bytes1),
    )(up_flat, x_flat, wx.astype(act_dtype), bn)

    # ---- channel attention (GAB MLP): tiny, runs in the wrapper in f32 ---------------
    mean = jnp.sum(part_sums[..., 0], axis=1) / HW2                     # (N, n_out)
    hid = jnp.maximum(mean @ params["w1"] + params["b1"], 0.0)
    c_att = jax.nn.sigmoid(hid @ params["w2"] + params["b2"])           # (N, n_out)

    # Pack [w_sq | c_att] into one per-batch (n_out, 2) operand.
    w_sq = params["w_sq"].reshape(n_out, 1).astype(jnp.float32)
    att = jnp.concatenate(
        [jnp.broadcast_to(w_sq[None], (N, n_out, 1)), c_att[:, :, None]],
        axis=2).astype(jnp.float32)                                     # (N, n_out, 2)

    # ---- pass 2: spatial attention + fused combine, reads only y ---------------------
    flops2 = 4 * N * HW2 * n_out
    bytes2 = 2 * itemsize * N * n_out * HW2
    out = pl.pallas_call(
        _apply_kernel,
        out_shape=jax.ShapeDtypeStruct((N, n_out, HW2), act_dtype),
        grid_spec=pl.GridSpec(
            grid=(N, n_tiles),
            in_specs=[
                pl.BlockSpec((1, n_out, hw_tile), lambda n, t: (n, 0, t)),
                pl.BlockSpec((1, n_out, 2), lambda n, t: (n, 0, 0)),
            ],
            out_specs=pl.BlockSpec((1, n_out, hw_tile), lambda n, t: (n, 0, t)),
        ),
        compiler_params=pltpu.CompilerParams(
            dimension_semantics=("parallel", "parallel"), **cparams),
        cost_estimate=pl.CostEstimate(
            flops=flops2, transcendentals=N * HW2, bytes_accessed=bytes2),
    )(y, att)

    return out.reshape(N, n_out, H2, W2)


# ----------------------------------------------------------------------------- reference
def decoderv2_reference(up_p, x_p, params, *, eps=1e-5):
    """Pure-JAX reference mirroring the PyTorch Decoderv2.forward (NCHW)."""
    N, _, H, W = up_p.shape
    wt, bt, wx = params["wt"], params["bt"], params["wx"]
    up = jnp.einsum("nchw,codk->nohdwk", up_p, wt).reshape(
        N, wt.shape[1], 2 * H, 2 * W) + bt[None, :, None, None]
    xh = jnp.einsum("oc,nchw->nohw", wx, x_p)
    cat = jnp.concatenate([up, xh], axis=1)
    g = params["bn_gamma"][None, :, None, None]
    b = params["bn_beta"][None, :, None, None]
    m = params["bn_mean"][None, :, None, None]
    v = params["bn_var"][None, :, None, None]
    y = jnp.maximum((cat - m) / jnp.sqrt(v + eps) * g + b, 0.0)
    # SpatialAttention2d
    s = jax.nn.sigmoid(jnp.einsum("nchw,c->nhw", y, params["w_sq"][:, 0]))[:, None]
    # GAB
    gm = jnp.mean(y, axis=(2, 3))
    hid = jnp.maximum(gm @ params["w1"] + params["b1"], 0.0)
    c = jax.nn.sigmoid(hid @ params["w2"] + params["b2"])[:, :, None, None]
    return y * s + y * c


# ----------------------------------------------------------------------------- test
if __name__ == "__main__":
    key = jax.random.PRNGKey(0)
    N, up_in, x_in, n_out = 2, 16, 12, 16
    reduction = 16                      # Decoderv2 uses GAB(n_out, 16)
    hidden = max(n_out // reduction, 1)
    up_out = x_out = n_out // 2
    H, W = 16, 16                       # up_p spatial; output spatial is 32x32

    ks = jax.random.split(key, 12)
    up_p = jax.random.normal(ks[0], (N, up_in, H, W), jnp.float32)
    x_p = jax.random.normal(ks[1], (N, x_in, 2 * H, 2 * W), jnp.float32)
    params = dict(
        wt=jax.random.normal(ks[2], (up_in, up_out, 2, 2), jnp.float32) * 0.3,
        bt=jax.random.normal(ks[3], (up_out,), jnp.float32) * 0.1,
        wx=jax.random.normal(ks[4], (x_out, x_in), jnp.float32) * 0.3,
        bn_gamma=1.0 + 0.1 * jax.random.normal(ks[5], (n_out,), jnp.float32),
        bn_beta=0.1 * jax.random.normal(ks[6], (n_out,), jnp.float32),
        bn_mean=0.1 * jax.random.normal(ks[7], (n_out,), jnp.float32),
        bn_var=jax.random.uniform(ks[8], (n_out,), jnp.float32, minval=0.5, maxval=1.5),
        w_sq=jax.random.normal(ks[9], (n_out, 1), jnp.float32) * 0.5,
        w1=jax.random.normal(ks[10], (n_out, hidden), jnp.float32) * 0.5,
        b1=jnp.zeros((hidden,), jnp.float32),
        w2=jax.random.normal(ks[11], (hidden, n_out), jnp.float32) * 0.5,
        b2=jnp.zeros((n_out,), jnp.float32),
    )

    ref = decoderv2_reference(up_p, x_p, params)

    # f32 activation storage (hw_tile=256 -> 4 HW tiles: exercises the partial-sum path).
    fwd = jax.jit(functools.partial(decoderv2_forward, hw_tile=256))
    out = fwd(up_p, x_p, params)
    jax.block_until_ready(out)
    assert out.shape == (N, n_out, 2 * H, 2 * W)
    assert jnp.allclose(out, ref, atol=1e-4, rtol=1e-4), "mismatch vs reference (f32)"

    # bf16 activation storage (halves HBM traffic); math stays f32, looser tolerance.
    fwd_bf16 = jax.jit(functools.partial(decoderv2_forward, hw_tile=256,
                                         act_dtype=jnp.bfloat16))
    out_bf16 = fwd_bf16(up_p, x_p, params).astype(jnp.float32)
    jax.block_until_ready(out_bf16)
    assert jnp.allclose(out_bf16, ref, atol=1e-1, rtol=5e-2), "mismatch vs reference (bf16)"

    print("KERNEL_OK")
</pallas_src>

<mosaic_0001>
module attributes {stable_mosaic.version = 11 : i64} {
  func.func @_fuse_kernel(%arg0: i32, %arg1: i32, %arg2: memref<1x8x256xf32, #tpu.memory_space<vmem>>, %arg3: memref<1x12x256xf32, #tpu.memory_space<vmem>>, %arg4: memref<8x12xf32, #tpu.memory_space<vmem>>, %arg5: memref<16x2xf32, #tpu.memory_space<vmem>>, %arg6: memref<1x16x256xf32, #tpu.memory_space<vmem>>, %arg7: memref<1x1x16x1xf32, #tpu.memory_space<vmem>>) attributes {dimension_semantics = [#tpu.dimension_semantics<parallel>, #tpu.dimension_semantics<parallel>], iteration_bounds = array<i64: 2, 4>, scalar_prefetch = 0 : i64, scratch_operands = 0 : i64, tpu.core_type = #tpu.core_type<tc>, window_params = [{transform_indices = @transform_0, window_bounds = array<i64: 1, 8, 256>}, {transform_indices = @transform_1, window_bounds = array<i64: 1, 12, 256>}, {pipeline_mode = #tpu.pipeline_mode<synchronous>, transform_indices = @transform_2, window_bounds = array<i64: 8, 12>}, {pipeline_mode = #tpu.pipeline_mode<synchronous>, transform_indices = @transform_3, window_bounds = array<i64: 16, 2>}, {transform_indices = @transform_4, window_bounds = array<i64: 1, 16, 256>}, {transform_indices = @transform_5, window_bounds = array<i64: 1, 1, 16, 1>}]} {
    %c0 = arith.constant 0 : index
    %c0_0 = arith.constant 0 : index
    %0 = vector.load %arg5[%c0, %c0_0] : memref<16x2xf32, #tpu.memory_space<vmem>>, vector<16x1xf32>
    %c0_1 = arith.constant 0 : index
    %c1 = arith.constant 1 : index
    %1 = vector.load %arg5[%c0_1, %c1] : memref<16x2xf32, #tpu.memory_space<vmem>>, vector<16x1xf32>
    %c0_2 = arith.constant 0 : index
    %c0_3 = arith.constant 0 : index
    %c0_4 = arith.constant 0 : index
    %2 = vector.load %arg2[%c0_2, %c0_3, %c0_4] : memref<1x8x256xf32, #tpu.memory_space<vmem>>, vector<1x8x256xf32>
    %3 = vector.shape_cast %2 : vector<1x8x256xf32> to vector<8x256xf32>
    %c0_5 = arith.constant 0 : index
    %c0_6 = arith.constant 0 : index
    %4 = vector.load %arg4[%c0_5, %c0_6] : memref<8x12xf32, #tpu.memory_space<vmem>>, vector<8x12xf32>
    %c0_7 = arith.constant 0 : index
    %c0_8 = arith.constant 0 : index
    %c0_9 = arith.constant 0 : index
    %5 = vector.load %arg3[%c0_7, %c0_8, %c0_9] : memref<1x12x256xf32, #tpu.memory_space<vmem>>, vector<1x12x256xf32>
    %6 = vector.shape_cast %5 : vector<1x12x256xf32> to vector<12x256xf32>
    %cst = arith.constant dense<0.000000e+00> : vector<8x256xf32>
    %7 = tpu.matmul %4, %6, %cst {dimension_numbers = #tpu.dot_dimension_numbers<[1], [0], [0], [1], [0, 0, 1, 1], [], []>} : vector<8x12xf32>, vector<12x256xf32>, vector<8x256xf32> -> vector<8x256xf32>
    %8 = vector.extract_strided_slice %0 {offsets = [0, 0], sizes = [8, 1], strides = [1, 1]} : vector<16x1xf32> to vector<8x1xf32>
    %9 = vector.broadcast %8 : vector<8x1xf32> to vector<8x256xf32>
    %10 = arith.mulf %3, %9 : vector<8x256xf32>
    %11 = vector.extract_strided_slice %1 {offsets = [0, 0], sizes = [8, 1], strides = [1, 1]} : vector<16x1xf32> to vector<8x1xf32>
    %12 = vector.broadcast %11 : vector<8x1xf32> to vector<8x256xf32>
    %13 = arith.addf %10, %12 : vector<8x256xf32>
    %cst_10 = arith.constant 0.000000e+00 : f32
    %14 = vector.broadcast %cst_10 : f32 to vector<8x256xf32>
    %15 = arith.maximumf %13, %14 : vector<8x256xf32>
    %16 = vector.extract_strided_slice %0 {offsets = [8, 0], sizes = [8, 1], strides = [1, 1]} : vector<16x1xf32> to vector<8x1xf32>
    %17 = vector.broadcast %16 : vector<8x1xf32> to vector<8x256xf32>
    %18 = arith.mulf %7, %17 : vector<8x256xf32>
    %19 = vector.extract_strided_slice %1 {offsets = [8, 0], sizes = [8, 1], strides = [1, 1]} : vector<16x1xf32> to vector<8x1xf32>
    %20 = vector.broadcast %19 : vector<8x1xf32> to vector<8x256xf32>
    %21 = arith.addf %18, %20 : vector<8x256xf32>
    %cst_11 = arith.constant 0.000000e+00 : f32
    %22 = vector.broadcast %cst_11 : f32 to vector<8x256xf32>
    %23 = arith.maximumf %21, %22 : vector<8x256xf32>
    %c0_12 = arith.constant 0 : index
    %c0_13 = arith.constant 0 : index
    %c0_14 = arith.constant 0 : index
    %24 = vector.load %arg6[%c0_12, %c0_13, %c0_14] : memref<1x16x256xf32, #tpu.memory_space<vmem>>, vector<1x8x256xf32>
    %25 = vector.shape_cast %24 : vector<1x8x256xf32> to vector<8x256xf32>
    %26 = vector.shape_cast %15 : vector<8x256xf32> to vector<1x8x256xf32>
    tpu.vector_store %arg6[%c0_12, %c0_13, %c0_14], %26 {strides = array<i32>} : memref<1x16x256xf32, #tpu.memory_space<vmem>>, vector<1x8x256xf32>,
    %c0_15 = arith.constant 0 : index
    %c8 = arith.constant 8 : index
    %c0_16 = arith.constant 0 : index
    %27 = vector.load %arg6[%c0_15, %c8, %c0_16] : memref<1x16x256xf32, #tpu.memory_space<vmem>>, vector<1x8x256xf32>
    %28 = vector.shape_cast %27 : vector<1x8x256xf32> to vector<8x256xf32>
    %29 = vector.shape_cast %23 : vector<8x256xf32> to vector<1x8x256xf32>
    tpu.vector_store %arg6[%c0_15, %c8, %c0_16], %29 {strides = array<i32>} : memref<1x16x256xf32, #tpu.memory_space<vmem>>, vector<1x8x256xf32>,
    %cst_17 = arith.constant dense<0.000000e+00> : vector<8xf32>
    %30 = vector.multi_reduction <add>, %15, %cst_17 [1] : vector<8x256xf32> to vector<8xf32>
    %31 = vector.shape_cast %30 : vector<8xf32> to vector<8x1xf32>
    %c0_18 = arith.constant 0 : index
    %c0_19 = arith.constant 0 : index
    %c0_20 = arith.constant 0 : index
    %c0_21 = arith.constant 0 : index
    %32 = vector.load %arg7[%c0_18, %c0_19, %c0_20, %c0_21] : memref<1x1x16x1xf32, #tpu.memory_space<vmem>>, vector<1x1x8x1xf32>
    %33 = vector.shape_cast %32 : vector<1x1x8x1xf32> to vector<8x1xf32>
    %34 = vector.shape_cast %31 : vector<8x1xf32> to vector<1x1x8x1xf32>
    tpu.vector_store %arg7[%c0_18, %c0_19, %c0_20, %c0_21], %34 {strides = array<i32>} : memref<1x1x16x1xf32, #tpu.memory_space<vmem>>, vector<1x1x8x1xf32>,
    %cst_22 = arith.constant dense<0.000000e+00> : vector<8xf32>
    %35 = vector.multi_reduction <add>, %23, %cst_22 [1] : vector<8x256xf32> to vector<8xf32>
    %36 = vector.shape_cast %35 : vector<8xf32> to vector<8x1xf32>
    %c0_23 = arith.constant 0 : index
    %c0_24 = arith.constant 0 : index
    %c8_25 = arith.constant 8 : index
    %c0_26 = arith.constant 0 : index
    %37 = vector.load %arg7[%c0_23, %c0_24, %c8_25, %c0_26] : memref<1x1x16x1xf32, #tpu.memory_space<vmem>>, vector<1x1x8x1xf32>
    %38 = vector.shape_cast %37 : vector<1x1x8x1xf32> to vector<8x1xf32>
    %39 = vector.shape_cast %36 : vector<8x1xf32> to vector<1x1x8x1xf32>
    tpu.vector_store %arg7[%c0_23, %c0_24, %c8_25, %c0_26], %39 {strides = array<i32>} : memref<1x1x16x1xf32, #tpu.memory_space<vmem>>, vector<1x1x8x1xf32>,
    return
  }
  func.func @transform_0(%arg0: i32, %arg1: i32) -> (i32, i32, i32) {
    %c0_i32 = arith.constant 0 : i32
    %c0_i32_0 = arith.constant 0 : i32
    return %arg0, %c0_i32, %arg1 : i32, i32, i32
  }
  func.func @transform_1(%arg0: i32, %arg1: i32) -> (i32, i32, i32) {
    %c0_i32 = arith.constant 0 : i32
    %c0_i32_0 = arith.constant 0 : i32
    return %arg0, %c0_i32, %arg1 : i32, i32, i32
  }
  func.func @transform_2(%arg0: i32, %arg1: i32) -> (i32, i32) {
    %c0_i32 = arith.constant 0 : i32
    %c0_i32_0 = arith.constant 0 : i32
    %c0_i32_1 = arith.constant 0 : i32
    return %c0_i32, %c0_i32_0 : i32, i32
  }
  func.func @transform_3(%arg0: i32, %arg1: i32) -> (i32, i32) {
    %c0_i32 = arith.constant 0 : i32
    %c0_i32_0 = arith.constant 0 : i32
    %c0_i32_1 = arith.constant 0 : i32
    return %c0_i32, %c0_i32_0 : i32, i32
  }
  func.func @transform_4(%arg0: i32, %arg1: i32) -> (i32, i32, i32) {
    %c0_i32 = arith.constant 0 : i32
    %c0_i32_0 = arith.constant 0 : i32
    return %arg0, %c0_i32, %arg1 : i32, i32, i32
  }
  func.func @transform_5(%arg0: i32, %arg1: i32) -> (i32, i32, i32, i32) {
    %c0_i32 = arith.constant 0 : i32
    %c0_i32_0 = arith.constant 0 : i32
    %c0_i32_1 = arith.constant 0 : i32
    return %arg0, %arg1, %c0_i32, %c0_i32_0 : i32, i32, i32, i32
  }
}

module attributes {stable_mosaic.version = 11 : i64} {
  func.func @_apply_kernel(%arg0: i32, %arg1: i32, %arg2: memref<1x16x256xf32, #tpu.memory_space<vmem>>, %arg3: memref<1x16x2xf32, #tpu.memory_space<vmem>>, %arg4: memref<1x16x256xf32, #tpu.memory_space<vmem>>) attributes {dimension_semantics = [#tpu.dimension_semantics<parallel>, #tpu.dimension_semantics<parallel>], iteration_bounds = array<i64: 2, 4>, scalar_prefetch = 0 : i64, scratch_operands = 0 : i64, tpu.core_type = #tpu.core_type<tc>, window_params = [{transform_indices = @transform_0, window_bounds = array<i64: 1, 16, 256>}, {transform_indices = @transform_1, window_bounds = array<i64: 1, 16, 2>}, {transform_indices = @transform_2, window_bounds = array<i64: 1, 16, 256>}]} {
    %c0 = arith.constant 0 : index
    %c0_0 = arith.constant 0 : index
    %c0_1 = arith.constant 0 : index
    %0 = vector.load %arg2[%c0, %c0_0, %c0_1] : memref<1x16x256xf32, #tpu.memory_space<vmem>>, vector<1x16x256xf32>
    %1 = vector.shape_cast %0 : vector<1x16x256xf32> to vector<16x256xf32>
    %c0_2 = arith.constant 0 : index
    %c0_3 = arith.constant 0 : index
    %c0_4 = arith.constant 0 : index
    %2 = vector.load %arg3[%c0_2, %c0_3, %c0_4] : memref<1x16x2xf32, #tpu.memory_space<vmem>>, vector<1x16x1xf32>
    %3 = vector.shape_cast %2 : vector<1x16x1xf32> to vector<16x1xf32>
    %c0_5 = arith.constant 0 : index
    %c0_6 = arith.constant 0 : index
    %c1 = arith.constant 1 : index
    %4 = vector.load %arg3[%c0_5, %c0_6, %c1] : memref<1x16x2xf32, #tpu.memory_space<vmem>>, vector<1x16x1xf32>
    %5 = vector.shape_cast %4 : vector<1x16x1xf32> to vector<16x1xf32>
    %6 = vector.broadcast %3 : vector<16x1xf32> to vector<16x256xf32>
    %7 = arith.mulf %1, %6 : vector<16x256xf32>
    %cst = arith.constant dense<0.000000e+00> : vector<256xf32>
    %8 = vector.multi_reduction <add>, %7, %cst [0] : vector<16x256xf32> to vector<256xf32>
    %9 = vector.shape_cast %8 : vector<256xf32> to vector<1x256xf32>
    %10 = arith.negf %9 : vector<1x256xf32>
    %11 = math.exp %10 : vector<1x256xf32>
    %cst_7 = arith.constant 1.000000e+00 : f32
    %12 = vector.broadcast %cst_7 : f32 to vector<1x256xf32>
    %13 = arith.addf %12, %11 : vector<1x256xf32>
    %14 = arith.divf %12, %13 : vector<1x256xf32>
    %15 = vector.broadcast %14 : vector<1x256xf32> to vector<16x256xf32>
    %16 = vector.broadcast %5 : vector<16x1xf32> to vector<16x256xf32>
    %17 = arith.addf %15, %16 : vector<16x256xf32>
    %18 = arith.mulf %1, %17 : vector<16x256xf32>
    %c0_8 = arith.constant 0 : index
    %c0_9 = arith.constant 0 : index
    %c0_10 = arith.constant 0 : index
    %19 = vector.load %arg4[%c0_8, %c0_9, %c0_10] : memref<1x16x256xf32, #tpu.memory_space<vmem>>, vector<1x16x256xf32>
    %20 = vector.shape_cast %19 : vector<1x16x256xf32> to vector<16x256xf32>
    %21 = vector.shape_cast %18 : vector<16x256xf32> to vector<1x16x256xf32>
    tpu.vector_store %arg4[%c0_8, %c0_9, %c0_10], %21 {strides = array<i32>} : memref<1x16x256xf32, #tpu.memory_space<vmem>>, vector<1x16x256xf32>,
    return
  }
  func.func @transform_0(%arg0: i32, %arg1: i32) -> (i32, i32, i32) {
    %c0_i32 = arith.constant 0 : i32
    %c0_i32_0 = arith.constant 0 : i32
    return %arg0, %c0_i32, %arg1 : i32, i32, i32
  }
  func.func @transform_1(%arg0: i32, %arg1: i32) -> (i32, i32, i32) {
    %c0_i32 = arith.constant 0 : i32
    %c0_i32_0 = arith.constant 0 : i32
    %c0_i32_1 = arith.constant 0 : i32
    return %arg0, %c0_i32, %c0_i32_0 : i32, i32, i32
  }
  func.func @transform_2(%arg0: i32, %arg1: i32) -> (i32, i32, i32) {
    %c0_i32 = arith.constant 0 : i32
    %c0_i32_0 = arith.constant 0 : i32
    return %arg0, %c0_i32, %arg1 : i32, i32, i32
  }
}

</mosaic_0001>

<bundles_post_ra>
// kernel: decoderv2_forward.2
= control target key start
LH: loop header
LB: loop body
LE: loop exit
PB: predicated region body
PF: predicated region fallthrough
CT: control target
= control target key end

     0   :  { %s1540_s0 = inlined_call_operand.hbm [shape: f32[2,8,1024], index: 0, kind: input, shape index: {}]   ;;  %s1541_s1 = inlined_call_operand.hbm [shape: f32[2,12,1024], index: 1, kind: input, shape index: {}]   ;;  %s1542_s2 = inlined_call_operand.hbm [shape: f32[8,12], index: 2, kind: input, shape index: {}]   ;;  %s1543_s3 = inlined_call_operand.hbm [shape: f32[16,2], index: 3, kind: input, shape index: {}]   ;;  %s1544_s4 = inlined_call_operand.hbm [shape: f32[2,16,1024], index: 4, kind: output, shape index: {0}]   ;;  %s1545_s5 = inlined_call_operand.hbm [shape: f32[2,4,16,1], index: 5, kind: output, shape index: {1}]  }
   0x1   :  { %1554 = sst [smem:[#allocation22_spill]] %s1542_s2 }
   0x2   :  { %1555 = sst [smem:[#allocation23_spill]] %s1543_s3 }
   0x3   :  { %1556 = sst [smem:[#allocation24_spill]] %s1544_s4 }
   0x4   :  { %1557 = sst [smem:[#allocation25_spill]] %s1545_s5 }
   0x5   :  { %11 = vsyncpa [#allocation3], 0 }
   0x6   :  { %13 = vsyncpa [#allocation3 + $0x1], 0 }
   0x7   :  { %14 = vsyncpa [#allocation6], 0 }
   0x8   :  { %16 = vsyncpa [#allocation6 + $0x1], 0 }
   0x9   :  { %17 = vsyncpa [#allocation9], 0 }
   0xa   :  { %18 = vsyncpa [#allocation4], 0 }
   0xb   :  { %20 = vsyncpa [#allocation4 + $0x1], 0 }
   0xc   :  { %21 = vsyncpa [#allocation12], 0 }
   0xd   :  { %23 = vsyncpa [#allocation12 + $0x1], 0  ;;  %s1165_s18 = smov 0   ;;  %s1167_s19 = smov 0  }
   0xe   :  { %s1169_s20 = smov 0   ;;  %s1171_s21 = smov 0  }
   0xf   :  { %s1173_s22 = smov 0   ;;  %s1175_s23 = smov 0  }
  0x10   :  { %s1177_s24 = smov 0   ;;  %s1179_s25 = smov 0  }
  0x11 LB: > { %1558 = sst [smem:[#allocation19_spill]] %s1085_s18  ;;  %s1206_s26 = sadd.s32 4294967295, %s1113_s25   ;;  %s1113_s25 = sphi %s1179_s25, %s29_s25   ;;  %s1109_s24 = sphi %s1177_s24, %s1589_s24   ;;  %s1105_s23 = sphi %s1175_s23, %s1588_s23   ;;  %s1101_s22 = sphi %s1173_s22, %s1587_s22   ;;  %s1097_s21 = sphi %s1171_s21, %s1586_s21   ;;  %s1093_s20 = sphi %s1169_s20, %s1585_s20   ;;  %s1089_s19 = sphi %s1167_s19, %s1584_s19   ;;  %s1085_s18 = sphi %s1165_s18, %s1583_s18  }
  0x12   : > { %s690_s27 = sadd.s32 4294967294, %s1113_s25   ;;  %p63_p0 = scmp.ne.s32.totalorder %s1089_s19, %s1085_s18 }
  0x13   : > { %p1546_p1 = scmp.eq.s32.totalorder %s1206_s26, 0  ;;  %p165_p3 = scmp.eq.s32.totalorder %s690_s27, 7 }
  0x14   : > { %p691_p5 = scmp.ge.s32.totalorder %s1113_s25, 1  ;;  %p200_p7 = scmp.lt.s32.totalorder %s1113_s25, 9 }
  0x15   : > { %p1215_p4 = por %p1546_p1, %p63_p0  ;;  %p1220_p6 = por %p165_p3, %p63_p0 }
  0x16   : > { %p1225_p8 = pnand %p691_p5, %p200_p7  ;;  %s1115_s6 = smov [#allocation7]  }
  0x17   : > { %s1559_s28 = scalar_select %p1215_p4, 1, 0 }
  0x18   : > { %s1560_s29 = scalar_select %p1220_p6, 1, 0 }
  0x19   : > { %s1562_s30 = scalar_select %p1225_p8, 1, 0 }
  0x1a   : > { %1561 = sst [smem:[#allocation20_spill]] %s1560_s29  ;;  %s213_s7 = sshll.u32 %s1115_s6, 4  ;;  %s214_s7 = int_to_ptr.vmem [resolvable:$true] %s213_s7 }
  0x1b   : > { %p745_p9 = pneg %p1225_p8  ;;  %s1116_s8 = smov [#allocation8]  }
  0x1c   : > { %s223_s9 = sshll.u32 %s1116_s8, 4  ;;  %s1564_s2 = sld [smem:[#allocation22_spill]]  ;;  %s1237_s9 = int_to_ptr.vmem [resolvable:$true] %s223_s9 }
  0x1d   : > { %p1233_p10 = pnand %p745_p9, %p1546_p1 }
  0x1f   : > { %p857_p12 = pneg %p1233_p10 }
  0x22   : > { %s855_s13 = scalar_lea.hbm %s1564_s2, 128 }
  0x23   : > { %p856_p11 = scmp.ne.s32.totalorder %s1564_s2, %s855_s13  ;;  %p862_p3 = scmp.lt.u32.totalorder %s855_s13, %s1564_s2 }
  0x25   : > { %p858_p13 = pnand %p857_p12, %p856_p11 }
  0x27   : > { %p859_p0 = pneg %p858_p13 }
  0x29   : > { %p864_p5 = pnand %p862_p3, %p859_p0 }
  0x2b   : > { %867 = shalt.err (!%p864_p5)
}
  0x2c   : > { %s868_s27 = scalar_lea.vmem %s214_s7, 128  ;;  %p876_p2 = scmp.lt.s32.totalorder %s214_s7, %s214_s7 }
  0x2d   : > { %p869_p7 = scmp.ne.s32.totalorder %s214_s7, %s868_s27  ;;  %p877_p6 = scmp.lt.s32.totalorder %s868_s27, %s868_s27 }
  0x2f   : > { %p871_p9 = pnand %p869_p7, %p857_p12  ;;  %p878_p4 = por %p877_p6, %p876_p2 }
  0x31   : > { %p872_p1 = pneg %p871_p9 }
  0x33   : > { %p879_p8 = pnand %p878_p4, %p872_p1 }
  0x35   : > { %882 = shalt.err (!%p879_p8)
}
  0x36   : > { %748 = dma.hbm_to_vmem [thread:$0]  (!%p1233_p10), %s1564_s2, 128, %s214_s7, [#allocation6]  }
  0x37   : > { %s1565_s3 = sld [smem:[#allocation23_spill]] }
  0x3d   : > { %s883_s13 = scalar_lea.hbm %s1565_s3, 256 }
  0x3e   : > { %p884_p11 = scmp.ne.s32.totalorder %s1565_s3, %s883_s13  ;;  %p890_p4 = scmp.lt.u32.totalorder %s883_s13, %s1565_s3 }
  0x40   : > { %p886_p2 = pnand %p884_p11, %p857_p12 }
  0x42   : > { %p887_p1 = pneg %p886_p2 }
  0x44   : > { %p892_p6 = pnand %p890_p4, %p887_p1 }
  0x46   : > { %895 = shalt.err (!%p892_p6)
}
  0x47   : > { %s896_s7 = scalar_lea.vmem %s1237_s9, 256  ;;  %p904_p3 = scmp.lt.s32.totalorder %s1237_s9, %s1237_s9 }
  0x48   : > { %p897_p8 = scmp.ne.s32.totalorder %s1237_s9, %s896_s7  ;;  %p905_p5 = scmp.lt.s32.totalorder %s896_s7, %s896_s7 }
  0x4a   : > { %p899_p13 = pnand %p897_p8, %p857_p12  ;;  %p906_p7 = por %p905_p5, %p904_p3 }
  0x4c   : > { %p900_p0 = pneg %p899_p13 }
  0x4e   : > { %p907_p9 = pnand %p906_p7, %p900_p0 }
  0x50   : > { %910 = shalt.err (!%p907_p9)
}
  0x51   : > { %s1117_s27 = smov 128   ;;  %s1118_s6 = smov 8  }
  0x52   : > { %751 = dma.hbm_to_vmem [thread:$0]  (!%p1233_p10), %s1565_s3, 256, %s1237_s9, [#allocation9], %s1117_s27, %s1117_s27, %s1118_s6  }
  0x53   : > { %s38_s12 = sadd.s32 1, %s1105_s23  ;;  %s41_s13 = sadd.s32 1, %s1109_s24 }
  0x54   : > { %p39_p12 = scmp.ge.s32.totalorder %s38_s12, 4  ;;  %s50_s14 = sadd.s32 1, %s1093_s20 }
  0x55   : > { %p57_p11 = scmp.ne.s32.totalorder %s1093_s20, %s1089_s19  ;;  %p58_p2 = scmp.eq.s32.totalorder %s1113_s25, 0 }
  0x56   : > { %s1591_s12 = smov (%p39_p12, %s38_s12), 0  ;;  %s1593_s13 = smov (!%p39_p12, %s41_s13), %s1109_s24 }
  0x57   : > { %1566 = sst [smem:[#allocation21_spill]] %s1591_s12  ;;  %s46_s15 = ssub.s32 %s1105_s23, %s1591_s12 }
  0x58   : > { %p1297_p1 = por %p58_p2, %p57_p11  ;;  %p43_p10 = scmp.ge.s32.totalorder %s1593_s13, 2 }
  0x59   : > { %p1568_p4 = scmp.eq.s32.totalorder %s1206_s26, 7  ;;  %p768_p8 = scmp.lt.s32.totalorder %s1113_s25, 8 }
  0x5a   : > { %s1309_s16 = sand.u32 1, %s1093_s20   ;;  %s1595_s13 = smov (%p43_p10, %s1593_s13), 0 }
  0x5b   : > { %p1303_p6 = por %p1568_p4, %p57_p11  ;;  %s695_s17 = sshll.u32 %s1309_s16, 4 }
  0x5c   : > { %s45_s7 = ssub.s32 %s1109_s24, %s1595_s13  ;;  %s696_s6 = sshll.u32 %s1105_s23, 1 }
  0x5d   : > { %s47_s27 = sor.u32 %s46_s15, %s45_s7  ;;  %s697_s8 = sshll.u32 %s1109_s24, 3 }
  0x5e   : > { %p48_p13 = scmp.eq.s32.totalorder %s47_s27, 0  ;;  %s247_s11 = sadd.s32 %s697_s8, %s696_s6 }
  0x5f   : > { %s241_s2 = scalar_lea.vmem [#allocation2], %s695_s17  ;;  %s698_s29 = sshll.u32 %s247_s11, 7 }
  0x60   : > { %s251_s3 = sshll.u32 %s241_s2, 4  ;;  %s1328_s4 = scalar_lea.hbm %s1540_s0, %s698_s29  ;;  %s1323_s3 = int_to_ptr.vmem [resolvable:$true] %s251_s3 }
  0x61   : > { %s1321_s12 = scalar_select %p48_p13, %s1093_s20, %s50_s14  }
  0x62   : > { %p1334_p0 = pnand %p768_p8, %p1297_p1  ;;  %s699_s2 = sshll.u32 %s1309_s16, 5 }
  0x63   : > { %s701_s14 = sshll.u32 %s1109_s24, 4  ;;  %s238_s17 = scalar_lea.sflag [#allocation3], %s1309_s16 }
  0x64   : > { %s911_s7 = scalar_lea.hbm %s1328_s4, 256  ;;  %p913_p5 = pneg %p1334_p0 }
  0x65   : > { %p912_p3 = scmp.ne.s32.totalorder %s1328_s4, %s911_s7  ;;  %s916_s29 = scalar_lea.hbm %s1540_s0, 2048 }
  0x66   : > { %p917_p12 = scmp.lt.u32.totalorder %s1328_s4, %s1540_s0  ;;  %p918_p11 = scmp.lt.u32.totalorder %s916_s29, %s911_s7 }
  0x67   : > { %p914_p7 = pnand %p913_p5, %p912_p3  ;;  %p920_p1 = scmp.lt.u32.totalorder %s911_s7, %s1328_s4 }
  0x68   : > { %p919_p2 = por %p918_p11, %p917_p12 }
  0x69   : > { %p915_p9 = pneg %p914_p7 }
  0x6a   : > { %p921_p10 = por %p920_p1, %p919_p2 }
  0x6c   : > { %p922_p4 = pnand %p921_p10, %p915_p9 }
  0x6e   : > { %925 = shalt.err (!%p922_p4)
}
  0x6f   : > { %s926_s8 = scalar_lea.vmem %s1323_s3, 256  ;;  %s1119_s11 = smov [#allocation2]  }
  0x70   : > { %p927_p8 = scmp.ne.s32.totalorder %s1323_s3, %s926_s8  ;;  %s931_s5 = sshll.u32 %s1119_s11, 4  ;;  %s932_s5 = int_to_ptr.vmem [resolvable:$false] %s931_s5 }
  0x71   : > { %s933_s18 = scalar_lea.vmem %s932_s5, 512  ;;  %p934_p7 = scmp.lt.s32.totalorder %s1323_s3, %s932_s5 }
  0x72   : > { %p929_p13 = pnand %p927_p8, %p913_p5  ;;  %p935_p12 = scmp.lt.s32.totalorder %s933_s18, %s926_s8 }
  0x74   : > { %p930_p3 = pneg %p929_p13  ;;  %p936_p11 = por %p935_p12, %p934_p7 }
  0x76   : > { %p937_p2 = pnand %p936_p11, %p930_p3 }
  0x78   : > { %940 = shalt.err (!%p937_p2)
}
  0x79   : > { %755 = dma.hbm_to_vmem [thread:$0]  (!%p1334_p0), %s1328_s4, 256, %s1323_s3, %s238_s17  }
  0x7a   : > { %s268_s7 = sadd.s32 %s701_s14, %s696_s6  ;;  %s262_s29 = scalar_lea.vmem [#allocation5], %s699_s2 }
  0x7b   : > { %s271_s10 = sshll.u32 %s262_s29, 4  ;;  %s702_s27 = sshll.u32 %s268_s7, 7  ;;  %s1372_s10 = int_to_ptr.vmem [resolvable:$true] %s271_s10 }
  0x7c   : > { %s1377_s5 = scalar_lea.hbm %s1541_s1, %s702_s27  ;;  %s258_s18 = sand.u32 1, %s1113_s25  }
  0x7d   : > { %s1380_s3 = scalar_lea.sflag [#allocation6], %s258_s18  ;;  %s941_s4 = scalar_lea.hbm %s1377_s5, 512 }
  0x7e   : > { %p942_p9 = scmp.ne.s32.totalorder %s1377_s5, %s941_s4  ;;  %s946_s2 = scalar_lea.hbm %s1541_s1, 4096 }
  0x7f   : > { %p947_p4 = scmp.lt.u32.totalorder %s1377_s5, %s1541_s1  ;;  %p948_p8 = scmp.lt.u32.totalorder %s946_s2, %s941_s4 }
  0x80   : > { %p944_p1 = pnand %p942_p9, %p913_p5  ;;  %p950_p3 = scmp.lt.u32.totalorder %s941_s4, %s1377_s5 }
  0x81   : > { %p949_p13 = por %p948_p8, %p947_p4 }
  0x82   : > { %p945_p10 = pneg %p944_p1 }
  0x83   : > { %p951_p7 = por %p950_p3, %p949_p13 }
  0x85   : > { %p952_p12 = pnand %p951_p7, %p945_p10 }
  0x87   : > { %955 = shalt.err (!%p952_p12)
}
  0x88   : > { %s956_s7 = scalar_lea.vmem %s1372_s10, 512  ;;  %s1120_s29 = smov [#allocation5]  }
  0x89   : > { %p957_p11 = scmp.ne.s32.totalorder %s1372_s10, %s956_s7  ;;  %s961_s27 = sshll.u32 %s1120_s29, 4  ;;  %s962_s27 = int_to_ptr.vmem [resolvable:$false] %s961_s27 }
  0x8a   : > { %s963_s8 = scalar_lea.vmem %s962_s27, 1024  ;;  %p964_p1 = scmp.lt.s32.totalorder %s1372_s10, %s962_s27 }
  0x8b   : > { %p959_p2 = pnand %p957_p11, %p913_p5  ;;  %p965_p4 = scmp.lt.s32.totalorder %s963_s8, %s956_s7 }
  0x8d   : > { %p960_p9 = pneg %p959_p2  ;;  %p966_p8 = por %p965_p4, %p964_p1 }
  0x8f   : > { %p967_p13 = pnand %p966_p8, %p960_p9 }
  0x91   : > { %970 = shalt.err (!%p967_p13)
}
  0x92   : > { %s1121_s11 = smov 1024   ;;  %s1122_s18 = smov 256  }
  0x93   : > { %s1123_s4 = smov 16   ;;  %p1571_p5 = scmp.ne.s32.totalorder %s1562_s30, 0 }
  0x94   : > { %758 = dma.hbm_to_vmem [thread:$0]  (!%p1334_p0), %s1377_s5, 512, %s1372_s10, %s1380_s3, %s1121_s11, %s1122_s18, %s1123_s4  }
  0x95   : > { %283 = sbr.rel (%p1571_p5) target bundleno = 552 (0x228), region = 36  ;;  %s1409_s16 = sand.u32 (!%p1571_p5), 1, %s1089_s19  }
  0x96   : > { %s704_s6 = sshll.u32 (!%p1571_p5), %s1409_s16, 4  ;;  %s286_s2 = scalar_lea.sflag (!%p1571_p5), [#allocation3], %s1409_s16 }
  0x97   : > { %s1415_s14 = scalar_lea.vmem (!%p1571_p5), [#allocation2], %s704_s6  ;;  %p1572_p10 = scmp.ne.s32.totalorder (!%p1571_p5), %s1559_s28, 0 }
  0x9c   : > { %1060 = dma.done.wait (%p1572_p10), %s286_s2, 256  }
  0x9d   : > { %1062 = vsyncadd (%p1572_p10), %s286_s2, 4294967040  ;;  %s294_s30 = sand.u32 1, %s1206_s26   ;;  %s705_s15 = sshll.u32 %s1409_s16, 5 }
  0x9e   : > { %s295_s10 = scalar_lea.sflag [#allocation6], %s294_s30  ;;  %s298_s5 = scalar_lea.vmem [#allocation5], %s705_s15 }
  0x9f   : > { %1064 = dma.done.wait (%p1572_p10), %s295_s10, 512  }
  0xa0   : > { %1066 = vsyncadd (%p1572_p10), %s295_s10, 4294966784  ;;  %p1573_p0 = scmp.eq.s32.totalorder %s1206_s26, 0 }
  0xa2   : > { %1068 = dma.done.wait (%p1573_p0), [#allocation6], 128   ;;  %p1574_p3 = pmov %p1573_p0 }
  0xa3   : > { %p1575_p7 = pmov %p1573_p0 }
  0xa4   : > { %1070 = vsyncadd (%p1574_p3), [#allocation6], 4294967168 }
  0xa5   : > { %1072 = dma.done.wait (%p1575_p7), [#allocation9], 256   ;;  %p1576_p12 = pmov %p1573_p0 }
  0xa6   : > { %v1124_v0 = vmov 0.0   ;;  %v1125_v1 = vmov 0   ;;  %v1126_v2 = vmov 1   ;;  %vm359_vm0 = vcmask 1043456   ;;  %v352_v3 = vld [vmem:[%s298_s5 + $0x8] sm:$0xff]  ;;  %v351_v5 = vld [vmem:[%s298_s5] sm:$0xff] }
  0xa7   : > { %1074 = vsyncadd (%p1576_p12), [#allocation9], 4294967040  ;;  %430 = vmatprep.mubr.f32.mxu0 %v1124_v0  ;;  %852 = vset.pattern.permute.xlu0 %v1125_v1  ;;  %vm1127_vm1 = vmmov 1   ;;  %v354_v4 = vld [vmem:[%s298_s5 + $0x18] sm:$0xf]  ;;  %v346_v8 = vld [vmem:[#allocation8] sm:$0xff] }
  0xa8   : > { %853 = vset.pattern.permute.xlu1 %v1126_v2  ;;  %vm724_vm2 = vmpackc.low %vm359_vm0, %vm1127_vm1  ;;  %v723_v6 = vpack.c.bf16 %v354_v4, %v352_v3  ;;  %v353_v7 = vld [vmem:[%s298_s5 + $0x10] sm:$0xf]  ;;  %439 = vperm.xlu0 %852, %v346_v8   ;;  %v350_v11 = vld [vmem:[#allocation7] sm:$0xff]  ;;  %vm355_vm3 = vcmask 97280   ;;  %s335_s26 = scalar_lea.vmem [#allocation10], %s705_s15  ;;  %s715_s3 = sshll.u32 %s1097_s21, 1 }
  0xa9   : > { %v726_v9 = vpack.c.bf16 %v353_v7, %v351_v5  ;;  %445 = vperm.xlu1 %853, %v346_v8   ;;  %v347_v10 = vld [vmem:[#allocation8 + $0x8] sm:$0xff]  ;;  %v349_v13 = vld [vmem:[%s1415_s14 + $0x8] sm:$0xff]  ;;  %s501_s28 = sshll.u32 %s335_s26, 4  ;;  %s716_s17 = sshll.u32 %s1101_s22, 4  ;;  %s1445_s28 = int_to_ptr.vmem [resolvable:$true] %s501_s28 }
  0xaa   : > { %725 = vmatprep.subr.msk.bf16.mxu0 %vm724_vm2, %v723_v6  ;;  %v348_v12 = vld [vmem:[%s1415_s14] sm:$0xff]  ;;  %s498_s7 = sadd.s32 %s716_s17, %s715_s3  ;;  %s1577_s11 = sld [smem:[#allocation24_spill]] }
  0xab   : > { %728 = vmatpush1.bf16.msk.msra.mxu0 %vm724_vm2, %v726_v9  ;;  %s717_s29 = sshll.u32 %s498_s7, 7  ;;  %s481_s4 = scalar_lea.sflag [#allocation4], %s1409_s16 }
  0xac   : > { %454 = vperm.xlu0 %852, %v347_v10   ;;  %s971_s2 = scalar_lea.vmem %s1445_s28, 512  ;;  %s1128_s14 = smov [#allocation10]  }
  0xad   : > { %460 = vperm.xlu1 %853, %v347_v10   ;;  %p972_p11 = scmp.ne.s32.totalorder %s1445_s28, %s971_s2  ;;  %s975_s30 = sshll.u32 %s1128_s14, 4  ;;  %s976_s30 = int_to_ptr.vmem [resolvable:$false] %s975_s30 }
  0xae   : > { %712 = vmatmul.mubr.msk.f32.vlgmr.msra.gmra.mrb[0].mxu0 %vm355_vm3, %v350_v11  ;;  %s977_s15 = scalar_lea.vmem %s976_s30, 1024  ;;  %p978_p1 = scmp.lt.s32.totalorder %s1445_s28, %s976_s30 }
  0xaf   : > { %p973_p2 = pnand %p972_p11, %p1303_p6  ;;  %p979_p4 = scmp.lt.s32.totalorder %s977_s15, %s971_s2 }
  0xb0   : > { %854 = vset.pattern.permute.xlu0 %v1126_v2  ;;  %s1450_s18 = scalar_lea.hbm %s1577_s11, %s717_s29 }
  0xb1   : > { %p974_p9 = pneg %p973_p2  ;;  %p980_p8 = por %p979_p4, %p978_p1 }
  0xb3   : > { %p981_p13 = pnand %p980_p8, %p974_p9 }
 0x127   : > { %v440_v14 = vpop.permute.xlu0 %439 }
 0x128   : > { %v442_v15 = vmul.f32 %v440_v14, %v348_v12  ;;  %v443_v16 = vmul.f32 %v440_v14, %v349_v13  ;;  %v446_v17 = vpop.permute.xlu1 %445 }
 0x12a   : > { %v448_v18 = vadd.f32 %v446_v17, %v442_v15  ;;  %v449_v19 = vadd.f32 %v446_v17, %v443_v16 }
 0x12b   : > { %v455_v23 = vpop.permute.xlu0 %454 }
 0x12c   : > { %v450_v20 = vmax.f32 %v448_v18, 0.0  ;;  %v451_v21 = vmax.f32 %v449_v19, 0.0  ;;  %v461_v27 = vpop.permute.xlu1 %460 }
 0x12e   : > { %467 = vst [vmem:[%s335_s26] sm:$0xff] %v450_v20  ;;  %468 = vst [vmem:[%s335_s26 + $0x8] sm:$0xff] %v451_v21  ;;  %v471_v22 = vadd.f32 %v451_v21, %v450_v20 }
 0x130   : > { %472 = vadd.xlane.f32.xlu0 %v471_v22 }
 0x181   : > { %v432_v24 = vpop.f32.mrb[0].mxu0 }
 0x182   : > { %v457_v25 = vmul.f32 %v455_v23, %v432_v24  ;;  %v434_v26 = vpop.f32.mrb[1].mxu0 }
 0x183   : > { %v458_v28 = vmul.f32 %v455_v23, %v434_v26 }
 0x184   : > { %v463_v29 = vadd.f32 %v461_v27, %v457_v25 }
 0x185   : > { %v464_v30 = vadd.f32 %v461_v27, %v458_v28 }
 0x186   : > { %v465_v31 = vmax.f32 %v463_v29, 0.0 }
 0x187   : > { %v466_v32 = vmax.f32 %v464_v30, 0.0 }
 0x188   : > { %469 = vst [vmem:[%s335_s26 + $0x10] sm:$0xff] %v465_v31 }
 0x189   : > { %470 = vst [vmem:[%s335_s26 + $0x18] sm:$0xff] %v466_v32  ;;  %v476_v33 = vadd.f32 %v466_v32, %v465_v31 }
 0x18b   : > { %477 = vadd.xlane.f32.xlu1 %v476_v33 }
 0x18c   : > { %984 = shalt.err (!%p981_p13)
}
 0x18d   : > { %s985_s10 = scalar_lea.hbm %s1450_s18, 512  ;;  %s989_s17 = scalar_lea.hbm %s1577_s11, 4096 }
 0x18e   : > { %p986_p5 = scmp.ne.s32.totalorder %s1450_s18, %s985_s10  ;;  %p990_p3 = scmp.lt.u32.totalorder %s1450_s18, %s1577_s11 }
 0x18f   : > { %p991_p7 = scmp.lt.u32.totalorder %s989_s17, %s985_s10  ;;  %p993_p11 = scmp.lt.u32.totalorder %s985_s10, %s1450_s18 }
 0x190   : > { %p987_p10 = pnand %p986_p5, %p1303_p6 }
 0x191   : > { %p992_p12 = por %p991_p7, %p990_p3 }
 0x192   : > { %p988_p0 = pneg %p987_p10 }
 0x193   : > { %p994_p2 = por %p993_p11, %p992_p12 }
 0x195   : > { %p995_p9 = pnand %p994_p2, %p988_p0 }
 0x197   : > { %998 = shalt.err (!%p995_p9)
}
 0x198   : > { %s1129_s27 = smov 256   ;;  %s1130_s8 = smov 1024   ;;  %vm474_vm4 = vcmask 7168  }
 0x199   : > { %s1131_s2 = smov 16   ;;  %s342_s14 = scalar_lea.vmem [#allocation11], %s704_s6 }
 0x19a   : > { %741 = dma.vmem_to_hbm [thread:$0]  (%p1303_p6), %s1445_s28, 512, %s1450_s18, %s481_s4, %s1129_s27, %s1130_s8, %s1131_s2  }
 0x19b   : > { %s719_s30 = sshll.u32 %s1101_s22, 3  ;;  %s519_s10 = sshll.u32 %s342_s14, 4  ;;  %s1481_s10 = int_to_ptr.vmem [resolvable:$true] %s519_s10 }
 0x19c   : > { %s516_s15 = sadd.s32 %s719_s30, %s715_s3  ;;  %s1578_s7 = sld [smem:[#allocation25_spill]] }
 0x19d   : > { %s720_s5 = sshll.u32 %s516_s15, 7  ;;  %s486_s18 = scalar_lea.sflag [#allocation12], %s1409_s16 }
 0x19e   : > { %s999_s6 = scalar_lea.vmem %s1481_s10, 256  ;;  %s1132_s21 = smov [#allocation11]  }
 0x19f   : > { %p1000_p1 = scmp.ne.s32.totalorder %s1481_s10, %s999_s6  ;;  %s1003_s22 = sshll.u32 %s1132_s21, 4  ;;  %s1004_s22 = int_to_ptr.vmem [resolvable:$false] %s1003_s22 }
 0x1a0   : > { %s1005_s3 = scalar_lea.vmem %s1004_s22, 512  ;;  %p1006_p13 = scmp.lt.s32.totalorder %s1481_s10, %s1004_s22 }
 0x1a1   : > { %p1001_p4 = pnand %p1000_p1, %p1303_p6  ;;  %p1007_p5 = scmp.lt.s32.totalorder %s1005_s3, %s999_s6 }
 0x1a2   : > { %s1486_s28 = scalar_lea.hbm %s1578_s7, %s720_s5 }
 0x1a3   : > { %p1002_p8 = pneg %p1001_p4  ;;  %p1008_p10 = por %p1007_p5, %p1006_p13 }
 0x1a5   : > { %p1009_p0 = pnand %p1008_p10, %p1002_p8 }
 0x1bd   : > { %v473_v34 = vpop.xlane.xlu0 %472 }
 0x1be   : > { %475 = vst.msk [vmem:[%s342_s14] sm:$0xff] %vm474_vm4, %v473_v34 }
 0x218   : > { %v478_v35 = vpop.xlane.xlu1 %477 }
 0x219   : > { %479 = vst.msk [vmem:[%s342_s14 + $0x8] sm:$0xff] %vm474_vm4, %v478_v35 }
 0x21a   : > { %1012 = shalt.err (!%p1009_p0)
}
 0x21b   : > { %s1013_s4 = scalar_lea.hbm %s1486_s28, 256  ;;  %s1017_s8 = scalar_lea.hbm %s1578_s7, 2048 }
 0x21c   : > { %p1014_p3 = scmp.ne.s32.totalorder %s1486_s28, %s1013_s4  ;;  %p1018_p11 = scmp.lt.u32.totalorder %s1486_s28, %s1578_s7 }
 0x21d   : > { %p1019_p2 = scmp.lt.u32.totalorder %s1017_s8, %s1013_s4  ;;  %p1021_p1 = scmp.lt.u32.totalorder %s1013_s4, %s1486_s28 }
 0x21e   : > { %p1015_p7 = pnand %p1014_p3, %p1303_p6 }
 0x21f   : > { %p1020_p9 = por %p1019_p2, %p1018_p11 }
 0x220   : > { %p1016_p12 = pneg %p1015_p7 }
 0x221   : > { %p1022_p4 = por %p1021_p1, %p1020_p9 }
 0x223   : > { %p1023_p8 = pnand %p1022_p4, %p1016_p12 }
 0x225   : > { %1026 = shalt.err (!%p1023_p8)
}
 0x226   : > { %s1133_s30 = smov 128   ;;  %s1134_s15 = smov 8  }
 0x227   : > { %742 = dma.vmem_to_hbm [thread:$0]  (%p1303_p6), %s1481_s10, 256, %s1486_s28, %s486_s18, %s1133_s30, %s1133_s30, %s1134_s15  }
 0x228 PF: > { %s1579_s5 = sld [smem:[#allocation19_spill]]  ;;  %s1580_s26 = sld [smem:[#allocation20_spill]] }
 0x229   : > { %p771_p13 = scmp.ge.s32.totalorder %s1113_s25, 2 }
 0x22e   : > { %s534_s17 = sand.u32 1, %s1579_s5   ;;  %p1581_p5 = scmp.ne.s32.totalorder %s1580_s26, 0 }
 0x22f   : > { %s535_s6 = scalar_lea.sflag [#allocation4], %s534_s17 }
 0x230   : > { %p760_p10 = pnand %p771_p13, %p1581_p5 }
 0x232   : > { %1076 = dma.done.wait (!%p760_p10), %s535_s6, 512  }
 0x233   : > { %1078 = vsyncadd (!%p760_p10), %s535_s6, 4294966784  ;;  %s544_s21 = scalar_lea.sflag [#allocation12], %s534_s17 }
 0x234   : > { %1080 = dma.done.wait (!%p760_p10), %s544_s21, 256  }
 0x235   : > { %1082 = vsyncadd (!%p760_p10), %s544_s21, 4294967040  ;;  %s29_s25 = sadd.s32 1, %s1113_s25   ;;  %s1582_s9 = sld [smem:[#allocation21_spill]] }
 0x236   : > { %p26_p0 = scmp.ge.s32.totalorder %s29_s25, 10   ;;  %s1583_s18 = smov %s1089_s19 }
 0x237   : > { %s1584_s19 = smov %s1093_s20  ;;  %s1585_s20 = smov %s1321_s12 }
 0x238   : > { %s1586_s21 = smov %s1105_s23  ;;  %s1587_s22 = smov %s1109_s24 }
 0x239   : > { %s1589_s24 = smov %s1595_s13  ;;  %28 = sbr.rel (!%p26_p0) target bundleno = 17 (0x11), region = 119 }
 0x23b   : > { %s1588_s23 = smov %s1582_s9 }
 0x240   :  { %549 = vsyncpa [#allocation3], 1 }
 0x241   :  { %551 = vsyncpa [#allocation3 + $0x1], 1 }
 0x242   :  { %552 = vsyncpa [#allocation6], 1 }
 0x243   :  { %554 = vsyncpa [#allocation6 + $0x1], 1 }
 0x244   :  { %555 = vsyncpa [#allocation9], 1 }
 0x245   :  { %556 = vsyncpa [#allocation4], 1 }
 0x246   :  { %558 = vsyncpa [#allocation4 + $0x1], 1 }
 0x247   :  { %559 = vsyncpa [#allocation12], 1 }
 0x248   :  { %561 = vsyncpa [#allocation12 + $0x1], 1 }

// kernel: decoderv2_forward.3
= control target key start
LH: loop header
LB: loop body
LE: loop exit
PB: predicated region body
PF: predicated region fallthrough
CT: control target
= control target key end

     0   :  { %s1096_s0 = inlined_call_operand.hbm [shape: f32[2,16,1024], index: 0, kind: input, shape index: {}]   ;;  %s1097_s1 = inlined_call_operand.hbm [shape: f32[2,16,2], index: 1, kind: input, shape index: {}]   ;;  %s1098_s2 = inlined_call_operand.hbm [shape: f32[2,16,1024], index: 2, kind: output, shape index: {}]  }
   0x1   :  { %1110 = sst [smem:[#allocation14_spill]] %s1098_s2 }
   0x2   :  { %7 = vsyncpa [#allocation3], 0 }
   0x3   :  { %9 = vsyncpa [#allocation3 + $0x1], 0 }
   0x4   :  { %10 = vsyncpa [#allocation6], 0 }
   0x5   :  { %12 = vsyncpa [#allocation6 + $0x1], 0 }
   0x6   :  { %13 = vsyncpa [#allocation4], 0 }
   0x7   :  { %15 = vsyncpa [#allocation4 + $0x1], 0  ;;  %s785_s9 = smov 0   ;;  %s787_s10 = smov 0  }
   0x8   :  { %s789_s11 = smov 0   ;;  %s791_s12 = smov 0  }
   0x9   :  { %s793_s13 = smov 0   ;;  %s795_s14 = smov 0  }
   0xa   :  { %s797_s15 = smov 0   ;;  %s799_s16 = smov 0  }
   0xb   :  { %s801_s17 = smov 0   ;;  %s803_s18 = smov 0  }
   0xc   :  { %s805_s19 = smov 0  }
   0xd LB: > { %s1099_s20 = sadd.s32 4294967295, %s755_s19   ;;  %s418_s21 = sadd.s32 4294967294, %s755_s19   ;;  %s755_s19 = sphi %s805_s19, %s21_s19   ;;  %s751_s18 = sphi %s803_s18, %s1144_s18   ;;  %s747_s17 = sphi %s801_s17, %s1143_s17   ;;  %s743_s16 = sphi %s799_s16, %s1142_s16   ;;  %s739_s15 = sphi %s797_s15, %s1141_s15   ;;  %s735_s14 = sphi %s795_s14, %s1140_s14   ;;  %s731_s13 = sphi %s793_s13, %s1139_s13   ;;  %s727_s12 = sphi %s791_s12, %s1138_s12   ;;  %s723_s11 = sphi %s789_s11, %s1137_s11   ;;  %s719_s10 = sphi %s787_s10, %s1136_s10   ;;  %s715_s9 = sphi %s785_s9, %s1135_s9  }
   0xe   : > { %s30_s22 = sadd.s32 1, %s747_s17  ;;  %s33_s23 = sadd.s32 1, %s751_s18 }
   0xf   : > { %p31_p0 = scmp.ge.s32.totalorder %s30_s22, 4  ;;  %s42_s24 = sadd.s32 1, %s735_s14 }
  0x10   : > { %p49_p1 = scmp.ne.s32.totalorder %s735_s14, %s731_s13  ;;  %p1105_p2 = scmp.eq.s32.totalorder %s755_s19, 0 }
  0x11   : > { %s1146_s22 = smov (%p31_p0, %s30_s22), 0  ;;  %s1148_s23 = smov (!%p31_p0, %s33_s23), %s751_s18 }
  0x12   : > { %1111 = sst [smem:[#allocation11_spill]] %s1146_s22  ;;  %s38_s25 = ssub.s32 %s747_s17, %s1146_s22 }
  0x13   : > { %p855_p3 = por %p1105_p2, %p49_p1  ;;  %p35_p4 = scmp.ge.s32.totalorder %s1148_s23, 2 }
  0x14   : > { %p1106_p5 = scmp.ne.s32.totalorder %s731_s13, %s727_s12  ;;  %p107_p6 = scmp.eq.s32.totalorder %s1099_s20, 7 }
  0x15   : > { %p113_p7 = scmp.eq.s32.totalorder %s418_s21, 7  ;;  %s1150_s23 = smov (%p35_p4, %s1148_s23), 0 }
  0x16   : > { %1113 = sst [smem:[#allocation12_spill]] %s1150_s23  ;;  %p865_p8 = por %p107_p6, %p49_p1 }
  0x17   : > { %p872_p9 = por %p113_p7, %p1106_p5  ;;  %s878_s29 = ssub.s32 %s751_s18, %s1150_s23 }
  0x18   : > { %s1114_s27 = scalar_select %p865_p8, 1, 0 }
  0x19   : > { %s1115_s28 = scalar_select %p872_p9, 1, 0 }
  0x1a   : > { %s39_s30 = sor.u32 %s38_s25, %s878_s29  ;;  %p1104_p12 = scmp.lt.s32.totalorder %s755_s19, 8 }
  0x1b   : > { %1116 = sst [smem:[#allocation13_spill]] %s1115_s28  ;;  %p40_p11 = scmp.eq.s32.totalorder %s39_s30, 0 }
  0x1c   : > { %s133_s3 = sand.u32 1, %s735_s14   ;;  %s422_s4 = sshll.u32 %s747_s17, 1 }
  0x1d   : > { %s886_s5 = scalar_select %p40_p11, %s735_s14, %s42_s24  }
  0x1e   : > { %s421_s6 = sshll.u32 %s133_s3, 5  ;;  %s423_s7 = sshll.u32 %s751_s18, 4 }
  0x1f   : > { %s143_s8 = sadd.s32 %s423_s7, %s422_s4  ;;  %s137_s21 = scalar_lea.vmem [#allocation2], %s421_s6 }
  0x20   : > { %s146_s20 = sshll.u32 %s137_s21, 4  ;;  %s424_s22 = sshll.u32 %s143_s8, 7  ;;  %s889_s20 = int_to_ptr.vmem [resolvable:$true] %s146_s20 }
  0x21   : > { %s894_s2 = scalar_lea.hbm %s1096_s0, %s424_s22  ;;  %p900_p13 = pnand %p1104_p12, %p855_p3 }
  0x22   : > { %s904_s25 = scalar_lea.sflag [#allocation3], %s133_s3  ;;  %s569_s30 = scalar_lea.hbm %s894_s2, 512 }
  0x23   : > { %p570_p0 = scmp.ne.s32.totalorder %s894_s2, %s569_s30  ;;  %p571_p1 = pneg %p900_p13 }
  0x24   : > { %s574_s26 = scalar_lea.hbm %s1096_s0, 4096  ;;  %p575_p3 = scmp.lt.u32.totalorder %s894_s2, %s1096_s0 }
  0x25   : > { %p572_p4 = pnand %p571_p1, %p570_p0  ;;  %p576_p7 = scmp.lt.u32.totalorder %s574_s26, %s569_s30 }
  0x26   : > { %p578_p12 = scmp.lt.u32.totalorder %s569_s30, %s894_s2 }
  0x27   : > { %p573_p6 = pneg %p572_p4  ;;  %p577_p11 = por %p576_p7, %p575_p3 }
  0x29   : > { %p579_p2 = por %p578_p12, %p577_p11 }
  0x2b   : > { %p580_p10 = pnand %p579_p2, %p573_p6 }
  0x2d   : > { %583 = shalt.err (!%p580_p10)
}
  0x2e   : > { %s584_s3 = scalar_lea.vmem %s889_s20, 512  ;;  %s757_s6 = smov [#allocation2]  }
  0x2f   : > { %p585_p0 = scmp.ne.s32.totalorder %s889_s20, %s584_s3  ;;  %s589_s7 = sshll.u32 %s757_s6, 4  ;;  %s590_s7 = int_to_ptr.vmem [resolvable:$false] %s589_s7 }
  0x30   : > { %s591_s8 = scalar_lea.vmem %s590_s7, 1024  ;;  %p592_p9 = scmp.lt.s32.totalorder %s889_s20, %s590_s7 }
  0x31   : > { %p587_p4 = pnand %p585_p0, %p571_p1  ;;  %p593_p3 = scmp.lt.s32.totalorder %s591_s8, %s584_s3 }
  0x33   : > { %p588_p5 = pneg %p587_p4  ;;  %p594_p7 = por %p593_p3, %p592_p9 }
  0x35   : > { %p595_p12 = pnand %p594_p7, %p588_p5 }
  0x37   : > { %598 = shalt.err (!%p595_p12)
}
  0x38   : > { %s758_s21 = smov 1024   ;;  %s759_s30 = smov 256  }
  0x39   : > { %s760_s22 = smov 16   ;;  %p428_p2 = scmp.ge.s32.totalorder %s755_s19, 1 }
  0x3a   : > { %450 = dma.hbm_to_vmem [thread:$0]  (!%p900_p13), %s894_s2, 512, %s889_s20, %s904_s25, %s758_s21, %s759_s30, %s760_s22  }
  0x3b   : > { %p175_p5 = scmp.lt.s32.totalorder %s755_s19, 9  ;;  %s1119_s26 = sadd.s32 4294967295, %s755_s19  }
  0x3c   : > { %p56_p10 = scmp.eq.s32.totalorder %s1119_s26, 0  ;;  %s68_s28 = sadd.s32 1, %s723_s11 }
  0x3d   : > { %p934_p9 = pnand %p428_p2, %p175_p5  ;;  %p75_p1 = scmp.ne.s32.totalorder %s723_s11, %s719_s10 }
  0x3e   : > { %p1120_p6 = scmp.ne.s32.totalorder %s731_s13, %s727_s12  ;;  %p81_p0 = scmp.ne.s32.totalorder %s719_s10, %s715_s9 }
  0x3f   : > { %p1122_p4 = scmp.eq.s32.totalorder %s878_s29, 0  ;;  %p1123_p13 = scmp.eq.s32.totalorder %s755_s19, 0 }
  0x40   : > { %p946_p11 = por %p56_p10, %p1120_p6  ;;  %p959_p7 = por %p81_p0, %p56_p10 }
  0x41   : > { %s955_s24 = scalar_select %p1122_p4, %s723_s11, %s68_s28  }
  0x42   : > { %s1121_s4 = scalar_select %p946_p11, 1, 0 }
  0x43   : > { %p77_p3 = por %p75_p1, %p1123_p13  ;;  %s156_s20 = sand.u32 1, %s723_s11  }
  0x44   : > { %s1124_s2 = scalar_select %p959_p7, 1, 0 }
  0x45   : > { %s440_s25 = sshll.u32 %s751_s18, 8  ;;  %s425_s3 = sshll.u32 %s156_s20, 4 }
  0x46   : > { %s968_s8 = scalar_lea.hbm %s1097_s1, %s440_s25  ;;  %s160_s9 = scalar_lea.vmem [#allocation5], %s425_s3 }
  0x47   : > { %s167_s29 = sshll.u32 %s160_s9, 4  ;;  %p1125_p12 = scmp.lt.s32.totalorder %s755_s19, 8  ;;  %s976_s29 = int_to_ptr.vmem [resolvable:$true] %s167_s29 }
  0x48   : > { %s978_s30 = scalar_lea.sflag [#allocation6], %s156_s20  ;;  %s599_s22 = scalar_lea.hbm %s968_s8, 256 }
  0x49   : > { %p972_p2 = pnand %p1125_p12, %p77_p3  ;;  %p600_p5 = scmp.ne.s32.totalorder %s968_s8, %s599_s22 }
  0x4a   : > { %s604_s25 = scalar_lea.hbm %s1097_s1, 512  ;;  %p605_p0 = scmp.lt.u32.totalorder %s968_s8, %s1097_s1 }
  0x4b   : > { %p601_p10 = pneg %p972_p2  ;;  %p606_p4 = scmp.lt.u32.totalorder %s604_s25, %s599_s22 }
  0x4c   : > { %p608_p3 = scmp.lt.u32.totalorder %s599_s22, %s968_s8 }
  0x4d   : > { %p602_p1 = pnand %p601_p10, %p600_p5  ;;  %p607_p13 = por %p606_p4, %p605_p0 }
  0x4f   : > { %p603_p6 = pneg %p602_p1  ;;  %p609_p12 = por %p608_p3, %p607_p13 }
  0x51   : > { %p610_p8 = pnand %p609_p12, %p603_p6 }
  0x53   : > { %613 = shalt.err (!%p610_p8)
}
  0x54   : > { %s614_s20 = scalar_lea.vmem %s976_s29, 256  ;;  %s761_s7 = smov [#allocation5]  }
  0x55   : > { %p615_p5 = scmp.ne.s32.totalorder %s976_s29, %s614_s20  ;;  %s619_s9 = sshll.u32 %s761_s7, 4  ;;  %s620_s9 = int_to_ptr.vmem [resolvable:$false] %s619_s9 }
  0x56   : > { %s621_s26 = scalar_lea.vmem %s620_s9, 512  ;;  %p622_p11 = scmp.lt.s32.totalorder %s976_s29, %s620_s9 }
  0x57   : > { %p617_p1 = pnand %p615_p5, %p601_p10  ;;  %p623_p0 = scmp.lt.s32.totalorder %s621_s26, %s614_s20 }
  0x59   : > { %p618_p7 = pneg %p617_p1  ;;  %p624_p4 = por %p623_p0, %p622_p11 }
  0x5b   : > { %p625_p13 = pnand %p624_p4, %p618_p7 }
  0x5d   : > { %628 = shalt.err (!%p625_p13)
}
  0x5e   : > { %s762_s22 = smov 128   ;;  %s763_s28 = smov 8  }
  0x5f   : > { %453 = dma.hbm_to_vmem [thread:$0]  (!%p972_p2), %s968_s8, 256, %s976_s29, %s978_s30, %s762_s22, %s762_s22, %s763_s28  }
  0x60   : > { %179 = sbr.rel (%p934_p9) target bundleno = 305 (0x131), region = 28  ;;  %s1009_s25 = sand.u32 (!%p934_p9), 1, %s731_s13  }
  0x61   : > { %s429_s3 = sshll.u32 (!%p934_p9), %s1009_s25, 5  ;;  %s182_s6 = scalar_lea.sflag (!%p934_p9), [#allocation3], %s1009_s25 }
  0x62   : > { %s185_s20 = scalar_lea.vmem (!%p934_p9), [#allocation2], %s429_s3  ;;  %p1127_p8 = scmp.ne.s32.totalorder (!%p934_p9), %s1121_s4, 0 }
  0x67   : > { %702 = dma.done.wait (%p1127_p8), %s182_s6, 512  }
  0x68   : > { %704 = vsyncadd (%p1127_p8), %s182_s6, 4294966784  ;;  %s190_s23 = sand.u32 1, %s719_s10   ;;  %p1128_p9 = scmp.ne.s32.totalorder %s1124_s2, 0 }
  0x69   : > { %s430_s8 = sshll.u32 %s190_s23, 4  ;;  %s191_s29 = scalar_lea.sflag [#allocation6], %s190_s23 }
  0x6a   : > { %s194_s21 = scalar_lea.vmem [#allocation5], %s430_s8 }
  0x6b   : > { %706 = dma.done.wait (%p1128_p9), %s191_s29, 256  }
  0x6c   : > { %708 = vsyncadd (%p1128_p9), %s191_s29, 4294967040  ;;  %v764_v0 = vmov 0   ;;  %v765_v1 = vmov 1   ;;  %v226_v2 = vld [vmem:[%s194_s21] sm:$0xff]  ;;  %v227_v3 = vld [vmem:[%s194_s21 + $0x8] sm:$0xff]  ;;  %s435_s4 = sshll.u32 %s739_s15, 1 }
  0x6d   : > { %558 = vset.pattern.permute.xlu0 %v764_v0  ;;  %559 = vset.pattern.permute.xlu1 %v765_v1  ;;  %v222_v5 = vld [vmem:[%s185_s20] sm:$0xff]  ;;  %v223_v6 = vld [vmem:[%s185_s20 + $0x8] sm:$0xff]  ;;  %v224_v7 = vld [vmem:[%s185_s20 + $0x10] sm:$0xff]  ;;  %s436_s2 = sshll.u32 %s743_s16, 4  ;;  %s219_s7 = scalar_lea.vmem [#allocation7], %s429_s3 }
  0x6e   : > { %230 = vperm.xlu0 %558, %v226_v2   ;;  %269 = vperm.xlu1 %559, %v226_v2   ;;  %v225_v8 = vld [vmem:[%s185_s20 + $0x18] sm:$0xff]  ;;  %s301_s30 = sadd.s32 %s436_s2, %s435_s4  ;;  %s304_s9 = sshll.u32 %s219_s7, 4  ;;  %s1028_s9 = int_to_ptr.vmem [resolvable:$true] %s304_s9 }
  0x6f   : > { %s437_s26 = sshll.u32 %s301_s30, 7  ;;  %s1129_s22 = sld [smem:[#allocation14_spill]] }
  0x70   : > { %s289_s3 = scalar_lea.sflag [#allocation4], %s1009_s25  ;;  %s629_s6 = scalar_lea.vmem %s1028_s9, 512 }
  0x71   : > { %p630_p11 = scmp.ne.s32.totalorder %s1028_s9, %s629_s6  ;;  %p1130_p7 = scmp.ne.s32.totalorder %s1114_s27, 0 }
  0x72   : > { %235 = vperm.xlu0 %558, %v227_v3   ;;  %273 = vperm.xlu1 %559, %v227_v3   ;;  %s766_s20 = smov [#allocation7]  }
  0x73   : > { %p631_p2 = pnand %p630_p11, %p1130_p7  ;;  %s633_s23 = sshll.u32 %s766_s20, 4  ;;  %s634_s23 = int_to_ptr.vmem [resolvable:$false] %s633_s23 }
  0x74   : > { %s635_s8 = scalar_lea.vmem %s634_s23, 1024  ;;  %p636_p6 = scmp.lt.s32.totalorder %s1028_s9, %s634_s23 }
  0x75   : > { %s1033_s28 = scalar_lea.hbm %s1129_s22, %s437_s26  ;;  %p632_p10 = pneg %p631_p2 }
  0x76   : > { %560 = vset.pattern.permute.xlu0 %v765_v1  ;;  %p637_p3 = scmp.lt.s32.totalorder %s635_s8, %s629_s6 }
  0x78   : > { %p638_p12 = por %p637_p3, %p636_p6 }
  0x7a   : > { %p639_p5 = pnand %p638_p12, %p632_p10 }
  0xed   : > { %v231_v4 = vpop.permute.xlu0 %230  ;;  %v270_v34 = vpop.permute.xlu1 %269 }
  0xee   : > { %v238_v10 = vmul.f32 %v231_v4, %v222_v5  ;;  %v239_v11 = vmul.f32 %v231_v4, %v223_v6 }
  0xf1   : > { %v236_v9 = vpop.permute.xlu0 %235  ;;  %v274_v36 = vpop.permute.xlu1 %273 }
  0xf2   : > { %v240_v12 = vmul.f32 %v236_v9, %v224_v7  ;;  %v241_v13 = vmul.f32 %v236_v9, %v225_v8 }
  0xf4   : > { %v242_v14 = vadd.f32 %v240_v12, %v238_v10  ;;  %v249_v15 = vadd.f32 %v241_v13, %v239_v11 }
  0xf6   : > { %v243_v16 = vrot.slane %v242_v14, 4  ;;  %v250_v17 = vrot.slane %v249_v15, 4 }
  0xf8   : > { %v244_v18 = vadd.f32 %v243_v16, %v242_v14  ;;  %v251_v19 = vadd.f32 %v250_v17, %v249_v15 }
  0xfa   : > { %v245_v20 = vrot.slane %v244_v18, 2  ;;  %v252_v21 = vrot.slane %v251_v19, 2 }
  0xfc   : > { %v246_v22 = vadd.f32 %v245_v20, %v244_v18  ;;  %v253_v23 = vadd.f32 %v252_v21, %v251_v19 }
  0xfe   : > { %v247_v24 = vrot.slane %v246_v22, 1  ;;  %v254_v25 = vrot.slane %v253_v23, 1 }
 0x100   : > { %v248_v26 = vadd.f32 %v247_v24, %v246_v22  ;;  %v255_v27 = vadd.f32 %v254_v25, %v253_v23 }
 0x102   : > { %v432_v28 = vmul.f32 -1.442695, %v248_v26  ;;  %v433_v29 = vmul.f32 -1.442695, %v255_v27 }
 0x104   : > { %561 = vpow2.f32 %v432_v28 }
 0x105   : > { %563 = vpow2.f32 %v433_v29 }
 0x10e   : > { %v562_v30 = vpop.eup %561 }
 0x10f   : > { %v564_v31 = vpop.eup %563  ;;  %v262_v32 = vadd.f32 1.0, %v562_v30 }
 0x110   : > { %v263_v33 = vadd.f32 1.0, %v564_v31 }
 0x111   : > { %565 = vrcp.f32 %v262_v32 }
 0x112   : > { %567 = vrcp.f32 %v263_v33 }
 0x11b   : > { %v566_v35 = vpop.eup %565 }
 0x11c   : > { %v568_v37 = vpop.eup %567  ;;  %v276_v38 = vadd.f32 %v566_v35, %v270_v34  ;;  %v278_v39 = vadd.f32 %v566_v35, %v274_v36 }
 0x11d   : > { %v277_v40 = vadd.f32 %v568_v37, %v270_v34  ;;  %v279_v41 = vadd.f32 %v568_v37, %v274_v36 }
 0x11e   : > { %v280_v42 = vmul.f32 %v276_v38, %v222_v5  ;;  %v282_v43 = vmul.f32 %v278_v39, %v224_v7 }
 0x11f   : > { %v281_v44 = vmul.f32 %v277_v40, %v223_v6  ;;  %v283_v45 = vmul.f32 %v279_v41, %v225_v8 }
 0x120   : > { %284 = vst [vmem:[%s219_s7] sm:$0xff] %v280_v42  ;;  %286 = vst [vmem:[%s219_s7 + $0x10] sm:$0xff] %v282_v43 }
 0x121   : > { %285 = vst [vmem:[%s219_s7 + $0x8] sm:$0xff] %v281_v44  ;;  %287 = vst [vmem:[%s219_s7 + $0x18] sm:$0xff] %v283_v45 }
 0x122   : > { %642 = shalt.err (!%p639_p5)
}
 0x123   : > { %s643_s29 = scalar_lea.hbm %s1033_s28, 512  ;;  %s647_s2 = scalar_lea.hbm %s1129_s22, 4096 }
 0x124   : > { %p644_p1 = scmp.ne.s32.totalorder %s1033_s28, %s643_s29  ;;  %p648_p13 = scmp.lt.u32.totalorder %s1033_s28, %s1129_s22 }
 0x125   : > { %p649_p8 = scmp.lt.u32.totalorder %s647_s2, %s643_s29  ;;  %p651_p11 = scmp.lt.u32.totalorder %s643_s29, %s1033_s28 }
 0x126   : > { %p645_p0 = pnand %p644_p1, %p1130_p7 }
 0x127   : > { %p650_p9 = por %p649_p8, %p648_p13 }
 0x128   : > { %p646_p4 = pneg %p645_p0 }
 0x129   : > { %p652_p2 = por %p651_p11, %p650_p9 }
 0x12b   : > { %p653_p10 = pnand %p652_p2, %p646_p4 }
 0x12d   : > { %656 = shalt.err (!%p653_p10)
}
 0x12e   : > { %s767_s26 = smov 256   ;;  %s768_s15 = smov 1024  }
 0x12f   : > { %s769_s16 = smov 16  }
 0x130   : > { %445 = dma.vmem_to_hbm [thread:$0]  (%p1130_p7), %s1028_s9, 512, %s1033_s28, %s289_s3, %s767_s26, %s768_s15, %s769_s16  }
 0x131 PF: > { %s1131_s6 = sld [smem:[#allocation13_spill]]  ;;  %p459_p6 = scmp.ge.s32.totalorder %s755_s19, 2 }
 0x132   : > { %s319_s20 = sand.u32 1, %s727_s12  }
 0x133   : > { %s320_s23 = scalar_lea.sflag [#allocation4], %s319_s20 }
 0x137   : > { %p1132_p3 = scmp.ne.s32.totalorder %s1131_s6, 0 }
 0x139   : > { %p455_p12 = pnand %p459_p6, %p1132_p3 }
 0x13b   : > { %710 = dma.done.wait (!%p455_p12), %s320_s23, 512  }
 0x13c   : > { %712 = vsyncadd (!%p455_p12), %s320_s23, 4294966784  ;;  %s21_s19 = sadd.s32 1, %s755_s19   ;;  %s1133_s27 = sld [smem:[#allocation11_spill]] }
 0x13d   : > { %p18_p5 = scmp.ge.s32.totalorder %s21_s19, 10   ;;  %s1134_s25 = sld [smem:[#allocation12_spill]] }
 0x13e   : > { %s1135_s9 = smov %s719_s10  ;;  %s1136_s10 = smov %s723_s11 }
 0x13f   : > { %s1137_s11 = smov %s955_s24  ;;  %s1138_s12 = smov %s731_s13 }
 0x140   : > { %s1139_s13 = smov %s735_s14  ;;  %s1140_s14 = smov %s886_s5 }
 0x141   : > { %s1141_s15 = smov %s747_s17  ;;  %s1142_s16 = smov %s751_s18 }
 0x142   : > { %s1143_s17 = smov %s1133_s27  ;;  %20 = sbr.rel (!%p18_p5) target bundleno = 13 (0xd), region = 86 }
 0x143   : > { %s1144_s18 = smov %s1134_s25 }
 0x149   :  { %325 = vsyncpa [#allocation3], 1 }
 0x14a   :  { %327 = vsyncpa [#allocation3 + $0x1], 1 }
 0x14b   :  { %328 = vsyncpa [#allocation6], 1 }
 0x14c   :  { %330 = vsyncpa [#allocation6 + $0x1], 1 }
 0x14d   :  { %331 = vsyncpa [#allocation4], 1 }
 0x14e   :  { %333 = vsyncpa [#allocation4 + $0x1], 1 }

</bundles_post_ra>
